<compile_context>
chip_gen: v7x
topology: tpu7x:2x2x1
jax: 0.10.0
libtpu: 0.0.40
codegen_flags: <defaults>
</compile_context>

<pallas_src>
import jax
import jax.numpy as jnp
from jax.experimental import pallas as pl
from jax.experimental.pallas import tpu as pltpu


def tinynet_kernel(w1_ref, b1_ref, w2_ref, b2_ref, x_ref, o_ref):
    # w1_ref, b1_ref, w2_ref : (H,) f32 in SMEM (scalar coefficients)
    # b2_ref                 : (1,) f32 in SMEM
    # x_ref, o_ref           : (BR, BC) f32 slabs in VMEM (batch, lane-dense)
    x = x_ref[...]
    hidden = w1_ref.shape[0]

    # Unrolled scalar-coefficient loop over the hidden dim: every op is a
    # full-width VPU op with sreg-splat weight operands; no broadcasts, no XLU.
    acc = w2_ref[0] * jnp.maximum(w1_ref[0] * x + b1_ref[0], 0.0)
    for j in range(1, hidden):
        acc = acc + w2_ref[j] * jnp.maximum(w1_ref[j] * x + b1_ref[j], 0.0)

    o_ref[...] = (acc + b2_ref[0]).astype(o_ref.dtype)


def _pick_tiling(n, block_rows, block_cols):
    """Choose a (sublane x lane)-dense tiling (br, bc, rows_pad) for batch n."""
    if n <= 8 * 128:
        return 8, 128, 8                      # single minimal (8, 128) tile
    bc = block_cols
    rows_total = pl.cdiv(n, bc)
    br = min(block_rows, pl.cdiv(rows_total, 8) * 8)
    # v7x has 2 TensorCores: if everything fits one block but can be split into
    # two aligned row-blocks, halve it so both cores get a grid step.
    if pl.cdiv(rows_total, br) == 1 and rows_total >= 16:
        br = pl.cdiv(pl.cdiv(rows_total, 2), 8) * 8
    rows_pad = pl.cdiv(rows_total, br) * br
    return br, bc, rows_pad


def tinynet_forward(x, w1, b1, w2, b2, *, block_rows=512, block_cols=512):
    """x: (N, 1) f32 -> (N,) f32, matching TinyNet.forward."""
    n = x.shape[0]
    hidden = w1.shape[-1]

    # Keep user-provided block sizes (8, 128)-aligned.
    block_rows = max(8, (block_rows // 8) * 8)
    block_cols = max(128, (block_cols // 128) * 128)

    # 1-D SMEM parameter layout (2-D SMEM would pad to (8,128)-word tiles).
    w1_s = w1.reshape(hidden).astype(jnp.float32)
    b1_s = b1.reshape(hidden).astype(jnp.float32)
    w2_s = w2.reshape(hidden).astype(jnp.float32)
    b2_s = b2.reshape(1).astype(jnp.float32)

    br, bc, rows_pad = _pick_tiling(n, block_rows, block_cols)
    n_pad = rows_pad * bc

    # Flatten the batch and fold it into a dense (rows_pad, bc) slab. The pad
    # only rewrites x when n is not a multiple of the slab size; for aligned
    # batches the reshape is free.
    x_flat = x.reshape(n)
    if n_pad != n:
        x_flat = jnp.pad(x_flat, (0, n_pad - n))
    x_slab = x_flat.reshape(rows_pad, bc)

    out_slab = pl.pallas_call(
        tinynet_kernel,
        out_shape=jax.ShapeDtypeStruct((rows_pad, bc), jnp.float32),
        grid=(rows_pad // br,),
        in_specs=[
            pl.BlockSpec(memory_space=pltpu.MemorySpace.SMEM),   # w1 (hidden,)
            pl.BlockSpec(memory_space=pltpu.MemorySpace.SMEM),   # b1 (hidden,)
            pl.BlockSpec(memory_space=pltpu.MemorySpace.SMEM),   # w2 (hidden,)
            pl.BlockSpec(memory_space=pltpu.MemorySpace.SMEM),   # b2 (1,)
            pl.BlockSpec((br, bc), lambda i: (i, 0)),            # x slab
        ],
        out_specs=pl.BlockSpec((br, bc), lambda i: (i, 0)),
        compiler_params=pltpu.CompilerParams(
            dimension_semantics=("parallel",),
        ),
    )(w1_s, b1_s, w2_s, b2_s, x_slab)

    # Drop batch padding; equivalent of .squeeze(1) on the (N, 1) result.
    return out_slab.reshape(n_pad)[:n]


def init_params(key, hidden=12):
    """Deterministic init (uniform, torch-Linear-like bounds)."""
    k1, k2, k3, k4 = jax.random.split(key, 4)
    # fc1: in_features=1 -> bound = 1/sqrt(1) = 1.0
    w1 = jax.random.uniform(k1, (1, hidden), jnp.float32, -1.0, 1.0)
    b1 = jax.random.uniform(k2, (1, hidden), jnp.float32, -1.0, 1.0)
    # fc2: in_features=hidden -> bound = 1/sqrt(hidden)
    bound = 1.0 / (hidden ** 0.5)
    w2 = jax.random.uniform(k3, (hidden, 1), jnp.float32, -bound, bound)
    b2 = jax.random.uniform(k4, (1, 1), jnp.float32, -bound, bound)
    return w1, b1, w2, b2


if __name__ == "__main__":
    key = jax.random.PRNGKey(0)
    kx, kp = jax.random.split(key)

    n, hidden = 8, 12
    x = jax.random.normal(kx, (n, 1), jnp.float32)
    w1, b1, w2, b2 = init_params(kp, hidden)

    out = tinynet_forward(x, w1, b1, w2, b2)
    out = jax.block_until_ready(out)

    # Pure-JAX reference of the same math.
    ref = (jnp.maximum(x @ w1 + b1, 0.0) @ w2 + b2)[:, 0]
    assert out.shape == (n,)
    assert jnp.allclose(out, ref, atol=1e-5, rtol=1e-5)

    print("KERNEL_OK")
</pallas_src>

<mosaic_0001>
module attributes {stable_mosaic.version = 11 : i64} {
  func.func @tinynet_kernel(%arg0: i32, %arg1: memref<12xf32, #tpu.memory_space<smem>>, %arg2: memref<12xf32, #tpu.memory_space<smem>>, %arg3: memref<12xf32, #tpu.memory_space<smem>>, %arg4: memref<1xf32, #tpu.memory_space<smem>>, %arg5: memref<8x128xf32, #tpu.memory_space<vmem>>, %arg6: memref<8x128xf32, #tpu.memory_space<vmem>>) attributes {dimension_semantics = [#tpu.dimension_semantics<parallel>], iteration_bounds = array<i64: 1>, scalar_prefetch = 0 : i64, scratch_operands = 0 : i64, tpu.core_type = #tpu.core_type<tc>, window_params = [{transform_indices = @transform_0, window_bounds = array<i64: 12>}, {transform_indices = @transform_1, window_bounds = array<i64: 12>}, {transform_indices = @transform_2, window_bounds = array<i64: 12>}, {transform_indices = @transform_3, window_bounds = array<i64: 1>}, {transform_indices = @transform_4, window_bounds = array<i64: 8, 128>}, {transform_indices = @transform_5, window_bounds = array<i64: 8, 128>}]} {
    %c0 = arith.constant 0 : index
    %c0_0 = arith.constant 0 : index
    %0 = vector.load %arg5[%c0, %c0_0] : memref<8x128xf32, #tpu.memory_space<vmem>>, vector<8x128xf32>
    %c0_1 = arith.constant 0 : index
    %1 = memref.load %arg3[%c0_1] : memref<12xf32, #tpu.memory_space<smem>>
    %c0_2 = arith.constant 0 : index
    %2 = memref.load %arg1[%c0_2] : memref<12xf32, #tpu.memory_space<smem>>
    %3 = vector.broadcast %2 : f32 to vector<8x128xf32>
    %4 = arith.mulf %3, %0 : vector<8x128xf32>
    %c0_3 = arith.constant 0 : index
    %5 = memref.load %arg2[%c0_3] : memref<12xf32, #tpu.memory_space<smem>>
    %6 = vector.broadcast %5 : f32 to vector<8x128xf32>
    %7 = arith.addf %4, %6 : vector<8x128xf32>
    %cst = arith.constant 0.000000e+00 : f32
    %8 = vector.broadcast %cst : f32 to vector<8x128xf32>
    %9 = arith.maximumf %7, %8 : vector<8x128xf32>
    %10 = vector.broadcast %1 : f32 to vector<8x128xf32>
    %11 = arith.mulf %10, %9 : vector<8x128xf32>
    %c1 = arith.constant 1 : index
    %12 = memref.load %arg3[%c1] : memref<12xf32, #tpu.memory_space<smem>>
    %c1_4 = arith.constant 1 : index
    %13 = memref.load %arg1[%c1_4] : memref<12xf32, #tpu.memory_space<smem>>
    %14 = vector.broadcast %13 : f32 to vector<8x128xf32>
    %15 = arith.mulf %14, %0 : vector<8x128xf32>
    %c1_5 = arith.constant 1 : index
    %16 = memref.load %arg2[%c1_5] : memref<12xf32, #tpu.memory_space<smem>>
    %17 = vector.broadcast %16 : f32 to vector<8x128xf32>
    %18 = arith.addf %15, %17 : vector<8x128xf32>
    %cst_6 = arith.constant 0.000000e+00 : f32
    %19 = vector.broadcast %cst_6 : f32 to vector<8x128xf32>
    %20 = arith.maximumf %18, %19 : vector<8x128xf32>
    %21 = vector.broadcast %12 : f32 to vector<8x128xf32>
    %22 = arith.mulf %21, %20 : vector<8x128xf32>
    %23 = arith.addf %11, %22 : vector<8x128xf32>
    %c2 = arith.constant 2 : index
    %24 = memref.load %arg3[%c2] : memref<12xf32, #tpu.memory_space<smem>>
    %c2_7 = arith.constant 2 : index
    %25 = memref.load %arg1[%c2_7] : memref<12xf32, #tpu.memory_space<smem>>
    %26 = vector.broadcast %25 : f32 to vector<8x128xf32>
    %27 = arith.mulf %26, %0 : vector<8x128xf32>
    %c2_8 = arith.constant 2 : index
    %28 = memref.load %arg2[%c2_8] : memref<12xf32, #tpu.memory_space<smem>>
    %29 = vector.broadcast %28 : f32 to vector<8x128xf32>
    %30 = arith.addf %27, %29 : vector<8x128xf32>
    %cst_9 = arith.constant 0.000000e+00 : f32
    %31 = vector.broadcast %cst_9 : f32 to vector<8x128xf32>
    %32 = arith.maximumf %30, %31 : vector<8x128xf32>
    %33 = vector.broadcast %24 : f32 to vector<8x128xf32>
    %34 = arith.mulf %33, %32 : vector<8x128xf32>
    %35 = arith.addf %23, %34 : vector<8x128xf32>
    %c3 = arith.constant 3 : index
    %36 = memref.load %arg3[%c3] : memref<12xf32, #tpu.memory_space<smem>>
    %c3_10 = arith.constant 3 : index
    %37 = memref.load %arg1[%c3_10] : memref<12xf32, #tpu.memory_space<smem>>
    %38 = vector.broadcast %37 : f32 to vector<8x128xf32>
    %39 = arith.mulf %38, %0 : vector<8x128xf32>
    %c3_11 = arith.constant 3 : index
    %40 = memref.load %arg2[%c3_11] : memref<12xf32, #tpu.memory_space<smem>>
    %41 = vector.broadcast %40 : f32 to vector<8x128xf32>
    %42 = arith.addf %39, %41 : vector<8x128xf32>
    %cst_12 = arith.constant 0.000000e+00 : f32
    %43 = vector.broadcast %cst_12 : f32 to vector<8x128xf32>
    %44 = arith.maximumf %42, %43 : vector<8x128xf32>
    %45 = vector.broadcast %36 : f32 to vector<8x128xf32>
    %46 = arith.mulf %45, %44 : vector<8x128xf32>
    %47 = arith.addf %35, %46 : vector<8x128xf32>
    %c4 = arith.constant 4 : index
    %48 = memref.load %arg3[%c4] : memref<12xf32, #tpu.memory_space<smem>>
    %c4_13 = arith.constant 4 : index
    %49 = memref.load %arg1[%c4_13] : memref<12xf32, #tpu.memory_space<smem>>
    %50 = vector.broadcast %49 : f32 to vector<8x128xf32>
    %51 = arith.mulf %50, %0 : vector<8x128xf32>
    %c4_14 = arith.constant 4 : index
    %52 = memref.load %arg2[%c4_14] : memref<12xf32, #tpu.memory_space<smem>>
    %53 = vector.broadcast %52 : f32 to vector<8x128xf32>
    %54 = arith.addf %51, %53 : vector<8x128xf32>
    %cst_15 = arith.constant 0.000000e+00 : f32
    %55 = vector.broadcast %cst_15 : f32 to vector<8x128xf32>
    %56 = arith.maximumf %54, %55 : vector<8x128xf32>
    %57 = vector.broadcast %48 : f32 to vector<8x128xf32>
    %58 = arith.mulf %57, %56 : vector<8x128xf32>
    %59 = arith.addf %47, %58 : vector<8x128xf32>
    %c5 = arith.constant 5 : index
    %60 = memref.load %arg3[%c5] : memref<12xf32, #tpu.memory_space<smem>>
    %c5_16 = arith.constant 5 : index
    %61 = memref.load %arg1[%c5_16] : memref<12xf32, #tpu.memory_space<smem>>
    %62 = vector.broadcast %61 : f32 to vector<8x128xf32>
    %63 = arith.mulf %62, %0 : vector<8x128xf32>
    %c5_17 = arith.constant 5 : index
    %64 = memref.load %arg2[%c5_17] : memref<12xf32, #tpu.memory_space<smem>>
    %65 = vector.broadcast %64 : f32 to vector<8x128xf32>
    %66 = arith.addf %63, %65 : vector<8x128xf32>
    %cst_18 = arith.constant 0.000000e+00 : f32
    %67 = vector.broadcast %cst_18 : f32 to vector<8x128xf32>
    %68 = arith.maximumf %66, %67 : vector<8x128xf32>
    %69 = vector.broadcast %60 : f32 to vector<8x128xf32>
    %70 = arith.mulf %69, %68 : vector<8x128xf32>
    %71 = arith.addf %59, %70 : vector<8x128xf32>
    %c6 = arith.constant 6 : index
    %72 = memref.load %arg3[%c6] : memref<12xf32, #tpu.memory_space<smem>>
    %c6_19 = arith.constant 6 : index
    %73 = memref.load %arg1[%c6_19] : memref<12xf32, #tpu.memory_space<smem>>
    %74 = vector.broadcast %73 : f32 to vector<8x128xf32>
    %75 = arith.mulf %74, %0 : vector<8x128xf32>
    %c6_20 = arith.constant 6 : index
    %76 = memref.load %arg2[%c6_20] : memref<12xf32, #tpu.memory_space<smem>>
    %77 = vector.broadcast %76 : f32 to vector<8x128xf32>
    %78 = arith.addf %75, %77 : vector<8x128xf32>
    %cst_21 = arith.constant 0.000000e+00 : f32
    %79 = vector.broadcast %cst_21 : f32 to vector<8x128xf32>
    %80 = arith.maximumf %78, %79 : vector<8x128xf32>
    %81 = vector.broadcast %72 : f32 to vector<8x128xf32>
    %82 = arith.mulf %81, %80 : vector<8x128xf32>
    %83 = arith.addf %71, %82 : vector<8x128xf32>
    %c7 = arith.constant 7 : index
    %84 = memref.load %arg3[%c7] : memref<12xf32, #tpu.memory_space<smem>>
    %c7_22 = arith.constant 7 : index
    %85 = memref.load %arg1[%c7_22] : memref<12xf32, #tpu.memory_space<smem>>
    %86 = vector.broadcast %85 : f32 to vector<8x128xf32>
    %87 = arith.mulf %86, %0 : vector<8x128xf32>
    %c7_23 = arith.constant 7 : index
    %88 = memref.load %arg2[%c7_23] : memref<12xf32, #tpu.memory_space<smem>>
    %89 = vector.broadcast %88 : f32 to vector<8x128xf32>
    %90 = arith.addf %87, %89 : vector<8x128xf32>
    %cst_24 = arith.constant 0.000000e+00 : f32
    %91 = vector.broadcast %cst_24 : f32 to vector<8x128xf32>
    %92 = arith.maximumf %90, %91 : vector<8x128xf32>
    %93 = vector.broadcast %84 : f32 to vector<8x128xf32>
    %94 = arith.mulf %93, %92 : vector<8x128xf32>
    %95 = arith.addf %83, %94 : vector<8x128xf32>
    %c8 = arith.constant 8 : index
    %96 = memref.load %arg3[%c8] : memref<12xf32, #tpu.memory_space<smem>>
    %c8_25 = arith.constant 8 : index
    %97 = memref.load %arg1[%c8_25] : memref<12xf32, #tpu.memory_space<smem>>
    %98 = vector.broadcast %97 : f32 to vector<8x128xf32>
    %99 = arith.mulf %98, %0 : vector<8x128xf32>
    %c8_26 = arith.constant 8 : index
    %100 = memref.load %arg2[%c8_26] : memref<12xf32, #tpu.memory_space<smem>>
    %101 = vector.broadcast %100 : f32 to vector<8x128xf32>
    %102 = arith.addf %99, %101 : vector<8x128xf32>
    %cst_27 = arith.constant 0.000000e+00 : f32
    %103 = vector.broadcast %cst_27 : f32 to vector<8x128xf32>
    %104 = arith.maximumf %102, %103 : vector<8x128xf32>
    %105 = vector.broadcast %96 : f32 to vector<8x128xf32>
    %106 = arith.mulf %105, %104 : vector<8x128xf32>
    %107 = arith.addf %95, %106 : vector<8x128xf32>
    %c9 = arith.constant 9 : index
    %108 = memref.load %arg3[%c9] : memref<12xf32, #tpu.memory_space<smem>>
    %c9_28 = arith.constant 9 : index
    %109 = memref.load %arg1[%c9_28] : memref<12xf32, #tpu.memory_space<smem>>
    %110 = vector.broadcast %109 : f32 to vector<8x128xf32>
    %111 = arith.mulf %110, %0 : vector<8x128xf32>
    %c9_29 = arith.constant 9 : index
    %112 = memref.load %arg2[%c9_29] : memref<12xf32, #tpu.memory_space<smem>>
    %113 = vector.broadcast %112 : f32 to vector<8x128xf32>
    %114 = arith.addf %111, %113 : vector<8x128xf32>
    %cst_30 = arith.constant 0.000000e+00 : f32
    %115 = vector.broadcast %cst_30 : f32 to vector<8x128xf32>
    %116 = arith.maximumf %114, %115 : vector<8x128xf32>
    %117 = vector.broadcast %108 : f32 to vector<8x128xf32>
    %118 = arith.mulf %117, %116 : vector<8x128xf32>
    %119 = arith.addf %107, %118 : vector<8x128xf32>
    %c10 = arith.constant 10 : index
    %120 = memref.load %arg3[%c10] : memref<12xf32, #tpu.memory_space<smem>>
    %c10_31 = arith.constant 10 : index
    %121 = memref.load %arg1[%c10_31] : memref<12xf32, #tpu.memory_space<smem>>
    %122 = vector.broadcast %121 : f32 to vector<8x128xf32>
    %123 = arith.mulf %122, %0 : vector<8x128xf32>
    %c10_32 = arith.constant 10 : index
    %124 = memref.load %arg2[%c10_32] : memref<12xf32, #tpu.memory_space<smem>>
    %125 = vector.broadcast %124 : f32 to vector<8x128xf32>
    %126 = arith.addf %123, %125 : vector<8x128xf32>
    %cst_33 = arith.constant 0.000000e+00 : f32
    %127 = vector.broadcast %cst_33 : f32 to vector<8x128xf32>
    %128 = arith.maximumf %126, %127 : vector<8x128xf32>
    %129 = vector.broadcast %120 : f32 to vector<8x128xf32>
    %130 = arith.mulf %129, %128 : vector<8x128xf32>
    %131 = arith.addf %119, %130 : vector<8x128xf32>
    %c11 = arith.constant 11 : index
    %132 = memref.load %arg3[%c11] : memref<12xf32, #tpu.memory_space<smem>>
    %c11_34 = arith.constant 11 : index
    %133 = memref.load %arg1[%c11_34] : memref<12xf32, #tpu.memory_space<smem>>
    %134 = vector.broadcast %133 : f32 to vector<8x128xf32>
    %135 = arith.mulf %134, %0 : vector<8x128xf32>
    %c11_35 = arith.constant 11 : index
    %136 = memref.load %arg2[%c11_35] : memref<12xf32, #tpu.memory_space<smem>>
    %137 = vector.broadcast %136 : f32 to vector<8x128xf32>
    %138 = arith.addf %135, %137 : vector<8x128xf32>
    %cst_36 = arith.constant 0.000000e+00 : f32
    %139 = vector.broadcast %cst_36 : f32 to vector<8x128xf32>
    %140 = arith.maximumf %138, %139 : vector<8x128xf32>
    %141 = vector.broadcast %132 : f32 to vector<8x128xf32>
    %142 = arith.mulf %141, %140 : vector<8x128xf32>
    %143 = arith.addf %131, %142 : vector<8x128xf32>
    %c0_37 = arith.constant 0 : index
    %144 = memref.load %arg4[%c0_37] : memref<1xf32, #tpu.memory_space<smem>>
    %145 = vector.broadcast %144 : f32 to vector<8x128xf32>
    %146 = arith.addf %143, %145 : vector<8x128xf32>
    %c0_38 = arith.constant 0 : index
    %c0_39 = arith.constant 0 : index
    %147 = vector.load %arg6[%c0_38, %c0_39] : memref<8x128xf32, #tpu.memory_space<vmem>>, vector<8x128xf32>
    tpu.vector_store %arg6[%c0_38, %c0_39], %146 {strides = array<i32>} : memref<8x128xf32, #tpu.memory_space<vmem>>, vector<8x128xf32>,
    return
  }
  func.func @transform_0(%arg0: i32) -> i32 {
    %c0_i32 = arith.constant 0 : i32
    %c0_i32_0 = arith.constant 0 : i32
    return %c0_i32 : i32
  }
  func.func @transform_1(%arg0: i32) -> i32 {
    %c0_i32 = arith.constant 0 : i32
    %c0_i32_0 = arith.constant 0 : i32
    return %c0_i32 : i32
  }
  func.func @transform_2(%arg0: i32) -> i32 {
    %c0_i32 = arith.constant 0 : i32
    %c0_i32_0 = arith.constant 0 : i32
    return %c0_i32 : i32
  }
  func.func @transform_3(%arg0: i32) -> i32 {
    %c0_i32 = arith.constant 0 : i32
    %c0_i32_0 = arith.constant 0 : i32
    return %c0_i32 : i32
  }
  func.func @transform_4(%arg0: i32) -> (i32, i32) {
    %c0_i32 = arith.constant 0 : i32
    %c0_i32_0 = arith.constant 0 : i32
    return %arg0, %c0_i32 : i32, i32
  }
  func.func @transform_5(%arg0: i32) -> (i32, i32) {
    %c0_i32 = arith.constant 0 : i32
    %c0_i32_0 = arith.constant 0 : i32
    return %arg0, %c0_i32 : i32, i32
  }
}

</mosaic_0001>

<bundles_post_ra>
// kernel: tpu_custom_call.1
= control target key start
LH: loop header
LB: loop body
LE: loop exit
PB: predicated region body
PF: predicated region fallthrough
CT: control target
= control target key end

     0   :  { %11 = vsyncpa [#allocation5], 0  ;;  %s473_s0 = inlined_call_operand.vmem [shape: f32[12], index: 0, kind: input, shape index: {}]   ;;  %s474_s1 = inlined_call_operand.vmem [shape: f32[12], index: 1, kind: input, shape index: {}]   ;;  %s475_s2 = inlined_call_operand.vmem [shape: f32[12], index: 2, kind: input, shape index: {}]   ;;  %s476_s3 = inlined_call_operand.<no memory space> [shape: f32[1], index: 3, kind: input, shape index: {}]   ;;  %s477_s4 = inlined_call_operand.vmem [shape: f32[8,128], index: 4, kind: input, shape index: {}]   ;;  %s478_s5 = inlined_call_operand.hbm [shape: f32[8,128], index: 5, kind: output, shape index: {}]  }
   0x1   :  { %12 = vsyncpa [#allocation7], 0  ;;  %s30_s20 = sshll.u32 %s474_s1, 4  ;;  %s31_s20 = int_to_ptr.vmem [resolvable:$true] %s30_s20 }
   0x2   :  { %13 = vsyncpa [#allocation4], 0  ;;  %s20_s23 = sshll.u32 %s473_s0, 4  ;;  %s247_s24 = scalar_lea.vmem %s31_s20, 16  ;;  %s21_s23 = int_to_ptr.vmem [resolvable:$true] %s20_s23 }
   0x3   :  { %p248_p0 = scmp.ne.s32.totalorder %s31_s20, %s247_s24  ;;  %p252_p1 = scmp.lt.s32.totalorder %s31_s20, %s31_s20 }
   0x4   :  { %p253_p2 = scmp.lt.s32.totalorder %s247_s24, %s247_s24 }
   0x6   :  { %p254_p3 = por %p253_p2, %p252_p1 }
   0x8   :  { %p255_p4 = pnand %p254_p3, %p248_p0 }
   0xa   :  { %258 = shalt.err (!%p255_p4)
}
   0xb   :  { %s311_s25 = smov [#allocation6]   ;;  %s259_s26 = scalar_lea.vmem %s21_s23, 16 }
   0xc   :  { %33 = dma.vmem_to_smem %s31_s20, 16, %s311_s25, [#allocation7]  }
   0xd   :  { %p260_p5 = scmp.ne.s32.totalorder %s21_s23, %s259_s26  ;;  %p264_p6 = scmp.lt.s32.totalorder %s21_s23, %s21_s23 }
   0xe   :  { %p265_p7 = scmp.lt.s32.totalorder %s259_s26, %s259_s26 }
  0x10   :  { %p266_p8 = por %p265_p7, %p264_p6 }
  0x12   :  { %p267_p9 = pnand %p266_p8, %p260_p5 }
  0x14   :  { %270 = shalt.err (!%p267_p9)
}
  0x15   :  { %s312_s1 = smov [#allocation3]   ;;  %s40_s28 = sshll.u32 %s475_s2, 4  ;;  %s41_s28 = int_to_ptr.vmem [resolvable:$true] %s40_s28 }
  0x16   :  { %23 = dma.vmem_to_smem %s21_s23, 16, %s312_s1, [#allocation5]  }
  0x17   :  { %s271_s29 = scalar_lea.vmem %s41_s28, 16  ;;  %p276_p11 = scmp.lt.s32.totalorder %s41_s28, %s41_s28 }
  0x18   :  { %p272_p10 = scmp.ne.s32.totalorder %s41_s28, %s271_s29  ;;  %p277_p12 = scmp.lt.s32.totalorder %s271_s29, %s271_s29 }
  0x1a   :  { %p278_p13 = por %p277_p12, %p276_p11 }
  0x1c   :  { %p279_p0 = pnand %p278_p13, %p272_p10 }
  0x1e   :  { %282 = shalt.err (!%p279_p0)
}
  0x1f   :  { %s313_s30 = smov [#allocation8]  }
  0x20   :  { %43 = dma.vmem_to_smem %s41_s28, 16, %s313_s30, [#allocation7]  }
  0x21   :  { %305 = dma.done.wait [#allocation5], 16  }
  0x22   :  { %306 = vsyncadd [#allocation5], 4294967280 }
  0x23   :  { %307 = dma.done.wait [#allocation7], 32  }
  0x24   :  { %308 = vsyncadd [#allocation7], 4294967264 }
  0x25   :  { %57 = sfence }
  0x26   :  { %s354_s6 = sld [smem:[#allocation8]]  ;;  %s356_s2 = sld [smem:[#allocation8 + $0x1]]  ;;  %v363_v0 = vld [vmem:[%s477_s4] sm:$0xff] }
  0x27   :  { %s60_s7 = sld [smem:[#allocation3]]  ;;  %s211_s9 = sld [smem:[#allocation3 + $0x1]] }
  0x28   :  { %s63_s8 = sld [smem:[#allocation6]]  ;;  %s212_s10 = sld [smem:[#allocation6 + $0x1]] }
  0x29   :  { %s358_s11 = sld [smem:[#allocation8 + $0x2]]  ;;  %s367_s16 = sld [smem:[#allocation8 + $0x3]] }
  0x2a   :  { %s214_s12 = sld [smem:[#allocation3 + $0x2]]  ;;  %s217_s17 = sld [smem:[#allocation3 + $0x3]] }
  0x2b   :  { %s365_s15 = sld [smem:[#allocation6 + $0x2]]  ;;  %s369_s18 = sld [smem:[#allocation6 + $0x3]] }
  0x2c   :  { %s371_s19 = sld [smem:[#allocation3 + $0x4]]  ;;  %s378_s21 = sld [smem:[#allocation3 + $0x5]]  ;;  %v67_v7 = vstv %s354_s6  ;;  %v77_v10 = vstv %s356_s2 }
  0x2d   :  { %v61_v1 = vstv %s60_s7  ;;  %s374_s20 = sld [smem:[#allocation8 + $0x4]]  ;;  %v71_v4 = vstv %s211_s9  ;;  %s380_s22 = sld [smem:[#allocation6 + $0x5]] }
  0x2e   :  { %v62_v2 = vmul.f32 %v61_v1, %v363_v0  ;;  %v64_v3 = vstv %s63_s8  ;;  %s376_s4 = sld [smem:[#allocation6 + $0x4]]  ;;  %v74_v5 = vstv %s212_s10  ;;  %v72_v8 = vmul.f32 %v71_v4, %v363_v0  ;;  %s384_s23 = sld [smem:[#allocation3 + $0x6]] }
  0x2f   :  { %v88_v13 = vstv %s358_s11  ;;  %s390_s24 = sld [smem:[#allocation8 + $0x5]]  ;;  %s392_s25 = sld [smem:[#allocation6 + $0x6]]  ;;  %v99_v20 = vstv %s367_s16 }
  0x30   :  { %v65_v6 = vadd.f32 %v64_v3, %v62_v2  ;;  %v82_v9 = vstv %s214_s12  ;;  %v75_v15 = vadd.f32 %v74_v5, %v72_v8  ;;  %v93_v16 = vstv %s217_s17  ;;  %s395_s26 = sld [smem:[#allocation3 + $0x7]]  ;;  %s402_s0 = sld [smem:[#allocation8 + $0x6]] }
  0x31   :  { %v83_v11 = vmul.f32 %v82_v9, %v363_v0  ;;  %v85_v12 = vstv %s365_s15  ;;  %v96_v17 = vstv %s369_s18  ;;  %s397_s1 = sld [smem:[#allocation6 + $0x7]]  ;;  %v94_v19 = vmul.f32 %v93_v16, %v363_v0  ;;  %s404_s27 = sld [smem:[#allocation3 + $0x8]] }
  0x32   :  { %v66_v14 = vmax.f32 %v65_v6, 0.0  ;;  %v104_v21 = vstv %s371_s19  ;;  %v76_v23 = vmax.f32 %v75_v15, 0.0  ;;  %s408_s28 = sld [smem:[#allocation8 + $0x7]]  ;;  %s410_s29 = sld [smem:[#allocation6 + $0x8]]  ;;  %v115_v28 = vstv %s378_s21 }
  0x33   :  { %v86_v18 = vadd.f32 %v85_v12, %v83_v11  ;;  %v105_v24 = vmul.f32 %v104_v21, %v363_v0  ;;  %v97_v27 = vadd.f32 %v96_v17, %v94_v19  ;;  %v118_v29 = vstv %s380_s22  ;;  %s414_s30 = sld [smem:[#allocation3 + $0x9]]  ;;  %s420_s7 = sld [smem:[#allocation8 + $0x8]] }
  0x34   :  { %v68_v22 = vmul.f32 %v67_v7, %v66_v14  ;;  %v107_v25 = vstv %s376_s4  ;;  %s416_s6 = sld [smem:[#allocation6 + $0x9]]  ;;  %v78_v30 = vmul.f32 %v77_v10, %v76_v23  ;;  %v110_v32 = vstv %s374_s20  ;;  %s424_s8 = sld [smem:[#allocation3 + $0xa]] }
  0x35   :  { %v87_v26 = vmax.f32 %v86_v18, 0.0  ;;  %v108_v31 = vadd.f32 %v107_v25, %v105_v24  ;;  %v116_v33 = vmul.f32 %v115_v28, %v363_v0  ;;  %v98_v35 = vmax.f32 %v97_v27, 0.0  ;;  %s426_s2 = sld [smem:[#allocation6 + $0xa]]  ;;  %s429_s9 = sld [smem:[#allocation8 + $0x9]] }
  0x36   :  { %v126_v36 = vstv %s384_s23  ;;  %v129_v37 = vstv %s392_s25  ;;  %v79_v38 = vadd.f32 %v78_v30, %v68_v22  ;;  %v121_v43 = vstv %s390_s24  ;;  %s434_s10 = sld [smem:[#allocation3 + $0xb]]  ;;  %s442_s12 = sld [smem:[#allocation8 + $0xa]] }
  0x37   :  { %v89_v34 = vmul.f32 %v88_v13, %v87_v26  ;;  %v109_v39 = vmax.f32 %v108_v31, 0.0  ;;  %v119_v40 = vadd.f32 %v118_v29, %v116_v33  ;;  %v127_v41 = vmul.f32 %v126_v36, %v363_v0  ;;  %s436_s11 = sld [smem:[#allocation6 + $0xb]]  ;;  %s314_s16 = smov [#allocation9]  }
  0x38   :  { %v100_v42 = vmul.f32 %v99_v20, %v98_v35  ;;  %v137_v44 = vstv %s395_s26  ;;  %v140_v45 = vstv %s397_s1  ;;  %v132_v50 = vstv %s402_s0  ;;  %s240_s13 = sld [smem:[#allocation8 + $0xb]]  ;;  %s200_s17 = sshll.u32 %s314_s16, 4  ;;  %s201_s17 = int_to_ptr.vmem [resolvable:$true] %s200_s17 }
  0x39   :  { %v90_v46 = vadd.f32 %v89_v34, %v79_v38  ;;  %v111_v47 = vmul.f32 %v110_v32, %v109_v39  ;;  %v120_v48 = vmax.f32 %v119_v40, 0.0  ;;  %v130_v49 = vadd.f32 %v129_v37, %v127_v41  ;;  %s283_s18 = scalar_lea.vmem %s201_s17, 128  ;;  %p288_p2 = scmp.lt.s32.totalorder %s201_s17, %s201_s17 }
  0x3a   :  { %v138_v51 = vmul.f32 %v137_v44, %v363_v0  ;;  %v148_v52 = vstv %s404_s27  ;;  %v151_v53 = vstv %s410_s29  ;;  %v143_v59 = vstv %s408_s28  ;;  %p284_p1 = scmp.ne.s32.totalorder %s201_s17, %s283_s18  ;;  %p289_p3 = scmp.lt.s32.totalorder %s283_s18, %s283_s18 }
  0x3b   :  { %v101_v54 = vadd.f32 %v100_v42, %v90_v46  ;;  %v122_v55 = vmul.f32 %v121_v43, %v120_v48  ;;  %v131_v56 = vmax.f32 %v130_v49, 0.0  ;;  %v149_v57 = vmul.f32 %v148_v52, %v363_v0 }
  0x3c   :  { %v141_v58 = vadd.f32 %v140_v45, %v138_v51  ;;  %v159_v60 = vstv %s414_s30  ;;  %v162_v61 = vstv %s416_s6  ;;  %v154_v4 = vstv %s420_s7  ;;  %p290_p4 = por %p289_p3, %p288_p2 }
  0x3d   :  { %v112_v62 = vadd.f32 %v111_v47, %v101_v54  ;;  %v133_v63 = vmul.f32 %v132_v50, %v131_v56  ;;  %v152_v1 = vadd.f32 %v151_v53, %v149_v57  ;;  %v160_v2 = vmul.f32 %v159_v60, %v363_v0 }
  0x3e   :  { %v142_v3 = vmax.f32 %v141_v58, 0.0  ;;  %v170_v5 = vstv %s424_s8  ;;  %v173_v6 = vstv %s426_s2  ;;  %v165_v12 = vstv %s429_s9  ;;  %p291_p5 = pnand %p290_p4, %p284_p1 }
  0x3f   :  { %v123_v7 = vadd.f32 %v122_v55, %v112_v62  ;;  %v153_v8 = vmax.f32 %v152_v1, 0.0  ;;  %v163_v9 = vadd.f32 %v162_v61, %v160_v2  ;;  %v171_v10 = vmul.f32 %v170_v5, %v363_v0 }
  0x40   :  { %v144_v11 = vmul.f32 %v143_v59, %v142_v3  ;;  %v181_v13 = vstv %s434_s10  ;;  %v184_v14 = vstv %s436_s11  ;;  %v176_v19 = vstv %s442_s12 }
  0x41   :  { %v134_v15 = vadd.f32 %v133_v63, %v123_v7  ;;  %v155_v16 = vmul.f32 %v154_v4, %v153_v8  ;;  %v164_v17 = vmax.f32 %v163_v9, 0.0  ;;  %v174_v18 = vadd.f32 %v173_v6, %v171_v10 }
  0x42   :  { %v182_v20 = vmul.f32 %v181_v13, %v363_v0  ;;  %v187_v27 = vstv %s240_s13  ;;  %v191_v32 = vstv %s476_s3 }
  0x43   :  { %v145_v21 = vadd.f32 %v144_v11, %v134_v15  ;;  %v166_v22 = vmul.f32 %v165_v12, %v164_v17  ;;  %v175_v23 = vmax.f32 %v174_v18, 0.0 }
  0x44   :  { %v185_v24 = vadd.f32 %v184_v14, %v182_v20 }
  0x45   :  { %v156_v25 = vadd.f32 %v155_v16, %v145_v21  ;;  %v177_v26 = vmul.f32 %v176_v19, %v175_v23 }
  0x46   :  { %v186_v28 = vmax.f32 %v185_v24, 0.0 }
  0x47   :  { %v167_v29 = vadd.f32 %v166_v22, %v156_v25 }
  0x48   :  { %v188_v30 = vmul.f32 %v187_v27, %v186_v28 }
  0x49   :  { %v178_v31 = vadd.f32 %v177_v26, %v167_v29 }
  0x4b   :  { %v189_v33 = vadd.f32 %v188_v30, %v178_v31 }
  0x4d   :  { %v192_v34 = vadd.f32 %v191_v32, %v189_v33 }
  0x4f   :  { %193 = vst [vmem:[#allocation9] sm:$0xff] %v192_v34 }
  0x50   :  { %294 = shalt.err (!%p291_p5)
}
  0x51   :  { %s295_s4 = scalar_lea.hbm %s478_s5, 128 }
  0x52   :  { %p296_p6 = scmp.ne.s32.totalorder %s478_s5, %s295_s4  ;;  %p299_p7 = scmp.lt.u32.totalorder %s295_s4, %s478_s5 }
  0x54   :  { %p301_p8 = pnand %p299_p7, %p296_p6 }
  0x56   :  { %304 = shalt.err (!%p301_p8)
}
  0x57   :  { %203 = dma.vmem_to_hbm [thread:$0]  %s201_s17, 128, %s478_s5, [#allocation4]  }
  0x58   :  { %309 = dma.done.wait [#allocation4], 128  }
  0x59   :  { %310 = vsyncadd [#allocation4], 4294967168 }
  0x5a   :  { %207 = vsyncpa [#allocation4], 1 }
  0x5b   :  { %208 = vsyncpa [#allocation5], 1 }
  0x5c   :  { %209 = vsyncpa [#allocation7], 1 }

</bundles_post_ra>
